<compile_context>
chip_gen: v7x
topology: tpu7x:2x2x1
jax: 0.10.0
libtpu: 0.0.40
codegen_flags: <defaults>
</compile_context>

<pallas_src>
import functools
import math

import jax
import jax.numpy as jnp
from jax.experimental import pallas as pl
from jax.experimental.pallas import tpu as pltpu

_ROWS = 8  # full f32 sublane occupancy for every vreg / DMA in the stream


def _cdiv(a, b):
    return -(-a // b)


def _round_up(a, b):
    return _cdiv(a, b) * b


def _focal_partial_kernel(cols, total, block_lanes, tiles_per_group,
                          grid_tiles, mask_from, gamma, binary_targets,
                          approx_recip, x_ref, t_ref, out_ref):
    """Writes this tile's (ROWS, 1) partial row-sums into its own output slot.

    No cross-step accumulation: every grid step is independent, which both
    improves f32 summation accuracy (pairwise combine happens in JAX) and
    lets the leading grid axis be sharded across TensorCores.
    """
    g = pl.program_id(0) * tiles_per_group + pl.program_id(1)  # global tile id

    x = x_ref[...].astype(jnp.float32)
    t = t_ref[...].astype(jnp.float32)

    s = x * (2.0 * t - 1.0)
    e_s = jnp.exp(-jnp.abs(s))                       # exp(-|s|)   (EUP)
    if binary_targets:
        # t in {0,1}  =>  |s| == |x| and bce == softplus(-s):
        # 1 exp + 1 log (+ 1 recip) per element.
        bce = jnp.maximum(-s, 0.0) + jnp.log(1.0 + e_s)
    else:
        # General (soft-target) stable BCE-with-logits:
        #   max(x,0) - x*t + log(1 + exp(-|x|))       (2nd exp)
        e_x = jnp.exp(-jnp.abs(x))
        bce = jnp.maximum(x, 0.0) - x * t + jnp.log(1.0 + e_x)

    # sigmoid(-s) computed stably from exp(-|s|).
    num = jnp.where(s >= 0.0, e_s, 1.0)
    den = 1.0 + e_s
    if approx_recip:
        sig = num * pl.reciprocal(den, approx=True)  # EUP vrcp (v7x lever)
    else:
        sig = num / den

    # Focal modulation sigmoid(-s)**gamma.
    g_f = float(gamma)
    if g_f == int(g_f) and 0 <= int(g_f) <= 4:
        gi = int(g_f)                                # default gamma=2: one vmul
        w = jnp.ones_like(sig) if gi == 0 else sig
        for _ in range(gi - 1):
            w = w * sig
    else:
        w = jnp.exp(g_f * jnp.log(sig))
    loss = w * bce

    def write(v):
        out_ref[0] = jnp.sum(v, axis=1, keepdims=True)

    if mask_from >= grid_tiles:
        # Every tile of the grid is fully in-bounds and fully valid.
        write(loss)
    else:
        @pl.when(g < mask_from)
        def _():
            write(loss)

        @pl.when(g >= mask_from)
        def _():
            # Ragged final tile / zero-padded tail / clamped overhang tile:
            # select-out lanes whose flat element index is out of range
            # (multiplying garbage lanes by 0 could produce NaN).
            c = (jax.lax.broadcasted_iota(jnp.int32, loss.shape, 1)
                 + g * block_lanes)
            valid = c < cols
            if total != _ROWS * cols:                # zero-padded tail exists
                r = jax.lax.broadcasted_iota(jnp.int32, loss.shape, 0)
                valid = valid & (r * cols + c < total)   # int32: ok < ~2^31 elems
            write(jnp.where(valid, loss, 0.0))


def focal_loss(y_pred, y_true, gamma=2, alpha=500, *,
               binary_targets=False, approx_reciprocal=False,
               block_lanes=None):
    """alpha * mean( sigmoid(-x*(2t-1))**gamma * bce_with_logits(x, t) ).

    Inputs stream in their native dtype (pass bf16 logits/targets to halve
    HBM traffic; all math is f32 on the VPU/EUP — do NOT pre-cast).
    Set binary_targets=True only when every target is exactly 0 or 1.
    approx_reciprocal uses the EUP vrcp (~1e-4 rel. error) — useful when
    compute-bound (v7x); off by default to keep strict accuracy.
    """
    if y_pred.shape != y_true.shape:
        raise ValueError('Target size ({}) must be the same as input size ({})'
                         .format(y_true.shape, y_pred.shape))

    total = math.prod(y_pred.shape)
    if total == 0:
        return jnp.asarray(float('nan'), jnp.float32)

    x_isz = jnp.dtype(y_pred.dtype).itemsize
    t_isz = jnp.dtype(y_true.dtype).itemsize

    # ---- generation-aware block / VMEM sizing ------------------------------
    try:
        vmem_cap = int(pltpu.get_tpu_info().vmem_capacity_bytes)
    except Exception:
        vmem_cap = 64 * 1024 * 1024                  # conservative (v7x-sized)
    if block_lanes is None:
        # ~8 MiB per input block on 128-MiB-VMEM parts (v5e/v6e),
        # ~4 MiB on 64-MiB parts (v7x): 2 inputs x 2 buffers stay well clear
        # of VMEM while amortizing the ~0.35 us/step grid overhead.
        tgt = 8 * 2**20 if vmem_cap >= 96 * 2**20 else 4 * 2**20
        block_lanes = max(128, (tgt // (_ROWS * max(x_isz, t_isz))) // 128 * 128)

    # ---- flatten to (8, cols): full sublane occupancy for the whole stream --
    pad = (-total) % _ROWS
    cols = (total + pad) // _ROWS
    xf = y_pred.reshape(-1)
    tf = y_true.reshape(-1)
    if pad:
        # Rare fallback (total % 8 != 0): one extra HBM pass for the pad, but
        # avoids running the whole stream at 1-4 sublane occupancy.
        xf = jnp.pad(xf, (0, pad))
        tf = jnp.pad(tf, (0, pad))
    xp = xf.reshape(_ROWS, cols)                      # metadata-only when pad==0
    tp = tf.reshape(_ROWS, cols)

    # ---- column tiling: leading "parallel" axis gets >= 2 steps ------------
    if cols <= 256:
        bl = cols                                     # full-width single block
        n_tiles = 1
    else:
        bl = min(block_lanes, _round_up(_cdiv(cols, 2), 128))
        n_tiles = _cdiv(cols, bl)
    n_groups = 2 if n_tiles >= 2 else 1               # feeds v7x's 2 TensorCores
    tpg = _cdiv(n_tiles, n_groups)
    grid_tiles = n_groups * tpg

    ragged = (n_tiles * bl != cols)
    mask_from = n_tiles - 1 if (ragged or pad) else n_tiles

    if grid_tiles == n_tiles:
        in_index = lambda i, j: (0, i * tpg + j)
    else:  # odd tile count: clamp the single overhang tile (masked to 0 in-kernel)
        in_index = lambda i, j: (0, jnp.minimum(i * tpg + j, n_tiles - 1))

    kern = functools.partial(
        _focal_partial_kernel, cols, total, bl, tpg, grid_tiles, mask_from,
        float(gamma), bool(binary_targets), bool(approx_reciprocal))

    # 2 inputs x 2 pipeline buffers x block, plus output/compiler slack.
    needed = 2 * _ROWS * bl * (x_isz + t_isz) + 2 * 2**20
    vmem_limit = max(32 * 2**20, needed + 8 * 2**20)
    vmem_limit = min(vmem_limit, max(vmem_cap - 16 * 2**20, 32 * 2**20))

    partials = pl.pallas_call(
        kern,
        out_shape=jax.ShapeDtypeStruct((grid_tiles, _ROWS, 1), jnp.float32),
        grid_spec=pltpu.PrefetchScalarGridSpec(
            num_scalar_prefetch=0,
            grid=(n_groups, tpg),
            in_specs=[pl.BlockSpec((_ROWS, bl), in_index),
                      pl.BlockSpec((_ROWS, bl), in_index)],
            out_specs=pl.BlockSpec((1, _ROWS, 1),
                                   lambda i, j: (i * tpg + j, 0, 0)),
        ),
        compiler_params=pltpu.CompilerParams(
            # Leading axis is independent work -> safe for cross-TensorCore
            # sharding on v7x; harmless on single-TC v5e/v6e.
            dimension_semantics=("parallel", "arbitrary"),
            vmem_limit_bytes=int(vmem_limit),
        ),
    )(xp, tp)

    # Tiny O(grid_tiles * 8) pairwise combine + alpha / mean scaling in JAX.
    return alpha * jnp.sum(partials) / total


def _focal_loss_ref(x, t, gamma=2, alpha=500):
    """Pure-JAX transcription of the PyTorch reference, for verification."""
    x = x.astype(jnp.float32)
    t = t.astype(jnp.float32)
    max_val = jnp.maximum(-x, 0.0)
    loss = x - x * t + max_val + jnp.log(jnp.exp(-max_val) + jnp.exp(-x - max_val))
    invprobs = jax.nn.log_sigmoid(-x * (t * 2.0 - 1.0))
    loss = jnp.exp(invprobs * gamma) * loss
    return alpha * jnp.mean(loss)


if __name__ == "__main__":
    key = jax.random.PRNGKey(0)
    ks = jax.random.split(key, 6)

    def check(got, want, rtol=1e-4, atol=1e-4, tag=""):
        got = jax.block_until_ready(got)
        assert bool(jnp.allclose(got, want, rtol=rtol, atol=atol)), (
            tag, float(got), float(want))

    # 1) Base NCHW case (single full-width tile), f32, binary targets.
    B, C, H, W = 2, 4, 16, 16
    y_pred = jax.random.normal(ks[0], (B, C, H, W), dtype=jnp.float32)
    y_true = (jax.random.uniform(ks[1], (B, C, H, W)) < 0.3).astype(jnp.float32)
    ref = _focal_loss_ref(y_pred, y_true)
    check(focal_loss(y_pred, y_true), ref, tag="base")

    # 2) Gated binary-target fast path (mathematically exact for t in {0,1}).
    check(focal_loss(y_pred, y_true, binary_targets=True), ref, tag="binary")

    # 3) Approximate-reciprocal path (EUP vrcp), looser tolerance.
    check(focal_loss(y_pred, y_true, approx_reciprocal=True), ref,
          rtol=1e-2, atol=1e-2, tag="approx_recip")

    # 4) bf16 streaming (no wrapper cast; math is still f32 in-kernel).
    xb = y_pred.astype(jnp.bfloat16)
    tb = y_true.astype(jnp.bfloat16)
    check(focal_loss(xb, tb), _focal_loss_ref(xb, tb), tag="bf16")

    # 5) Multi-tile ragged stream + 2-way parallel split + clamped overhang
    #    tile (cols=600, block_lanes=128 -> 5 real tiles on a 2x3 grid).
    xr = jax.random.normal(ks[2], (2, 3, 20, 40), dtype=jnp.float32)
    tr = (jax.random.uniform(ks[3], (2, 3, 20, 40)) < 0.5).astype(jnp.float32)
    check(focal_loss(xr, tr, block_lanes=128), _focal_loss_ref(xr, tr),
          tag="ragged")
    check(focal_loss(xr, tr, block_lanes=128, binary_targets=True),
          _focal_loss_ref(xr, tr), tag="ragged_binary")

    # 6) total % 8 != 0 fallback (zero-padded tail) with soft targets
    #    (exercises the general, non-binary path + padding mask).
    xs = jax.random.normal(ks[4], (3, 5, 7, 11), dtype=jnp.float32)
    ts = jax.random.uniform(ks[5], (3, 5, 7, 11), dtype=jnp.float32)
    check(focal_loss(xs, ts), _focal_loss_ref(xs, ts), tag="padded_soft")

    print("KERNEL_OK")
</pallas_src>

<mosaic_0001>
module attributes {stable_mosaic.version = 11 : i64} {
  func.func @_focal_partial_kernel(%arg0: i32, %arg1: i32, %arg2: memref<8x256xf32, #tpu.memory_space<vmem>>, %arg3: memref<8x256xf32, #tpu.memory_space<vmem>>, %arg4: memref<1x8x1xf32, #tpu.memory_space<vmem>>) attributes {dimension_semantics = [#tpu.dimension_semantics<parallel>, #tpu.dimension_semantics<arbitrary>], iteration_bounds = array<i64: 1, 1>, scalar_prefetch = 0 : i64, scratch_operands = 0 : i64, tpu.core_type = #tpu.core_type<tc>, window_params = [{transform_indices = @transform_0, window_bounds = array<i64: 8, 256>}, {transform_indices = @transform_1, window_bounds = array<i64: 8, 256>}, {transform_indices = @transform_2, window_bounds = array<i64: 1, 8, 1>}]} {
    %c0 = arith.constant 0 : index
    %c0_0 = arith.constant 0 : index
    %0 = vector.load %arg2[%c0, %c0_0] : memref<8x256xf32, #tpu.memory_space<vmem>>, vector<8x256xf32>
    %c0_1 = arith.constant 0 : index
    %c0_2 = arith.constant 0 : index
    %1 = vector.load %arg3[%c0_1, %c0_2] : memref<8x256xf32, #tpu.memory_space<vmem>>, vector<8x256xf32>
    %cst = arith.constant 2.000000e+00 : f32
    %2 = vector.broadcast %cst : f32 to vector<8x256xf32>
    %3 = arith.mulf %2, %1 : vector<8x256xf32>
    %cst_3 = arith.constant 1.000000e+00 : f32
    %4 = vector.broadcast %cst_3 : f32 to vector<8x256xf32>
    %5 = arith.subf %3, %4 : vector<8x256xf32>
    %6 = arith.mulf %0, %5 : vector<8x256xf32>
    %7 = math.absf %6 : vector<8x256xf32>
    %cst_4 = arith.constant 0.000000e+00 : f32
    %8 = vector.broadcast %cst_4 : f32 to vector<8x256xf32>
    %9 = arith.subf %8, %7 : vector<8x256xf32>
    %10 = math.exp %9 : vector<8x256xf32>
    %11 = math.absf %0 : vector<8x256xf32>
    %cst_5 = arith.constant 0.000000e+00 : f32
    %12 = vector.broadcast %cst_5 : f32 to vector<8x256xf32>
    %13 = arith.subf %12, %11 : vector<8x256xf32>
    %14 = math.exp %13 : vector<8x256xf32>
    %cst_6 = arith.constant 0.000000e+00 : f32
    %15 = vector.broadcast %cst_6 : f32 to vector<8x256xf32>
    %16 = arith.maximumf %0, %15 : vector<8x256xf32>
    %17 = arith.mulf %0, %1 : vector<8x256xf32>
    %18 = arith.subf %16, %17 : vector<8x256xf32>
    %cst_7 = arith.constant 1.000000e+00 : f32
    %19 = vector.broadcast %cst_7 : f32 to vector<8x256xf32>
    %20 = arith.addf %19, %14 : vector<8x256xf32>
    %21 = math.log %20 : vector<8x256xf32>
    %22 = arith.addf %18, %21 : vector<8x256xf32>
    %cst_8 = arith.constant 0.000000e+00 : f32
    %23 = vector.broadcast %cst_8 : f32 to vector<8x256xf32>
    %24 = arith.cmpf oge, %6, %23 : vector<8x256xf32>
    %cst_9 = arith.constant 1.000000e+00 : f32
    %25 = vector.broadcast %cst_9 : f32 to vector<8x256xf32>
    %26 = arith.select %24, %10, %25 : vector<8x256xi1>, vector<8x256xf32>
    %cst_10 = arith.constant 1.000000e+00 : f32
    %27 = vector.broadcast %cst_10 : f32 to vector<8x256xf32>
    %28 = arith.addf %27, %10 : vector<8x256xf32>
    %29 = arith.divf %26, %28 : vector<8x256xf32>
    %30 = arith.mulf %29, %29 : vector<8x256xf32>
    %31 = arith.mulf %30, %22 : vector<8x256xf32>
    %cst_11 = arith.constant dense<0.000000e+00> : vector<8xf32>
    %32 = vector.multi_reduction <add>, %31, %cst_11 [1] : vector<8x256xf32> to vector<8xf32>
    %33 = vector.shape_cast %32 : vector<8xf32> to vector<8x1xf32>
    %c0_12 = arith.constant 0 : index
    %c0_13 = arith.constant 0 : index
    %c0_14 = arith.constant 0 : index
    %34 = vector.load %arg4[%c0_12, %c0_13, %c0_14] : memref<1x8x1xf32, #tpu.memory_space<vmem>>, vector<1x8x1xf32>
    %35 = vector.shape_cast %34 : vector<1x8x1xf32> to vector<8x1xf32>
    %36 = vector.shape_cast %33 : vector<8x1xf32> to vector<1x8x1xf32>
    tpu.vector_store %arg4[%c0_12, %c0_13, %c0_14], %36 {strides = array<i32>} : memref<1x8x1xf32, #tpu.memory_space<vmem>>, vector<1x8x1xf32>,
    return
  }
  func.func @transform_0(%arg0: i32, %arg1: i32) -> (i32, i32) {
    %c1_i32 = arith.constant 1 : i32
    %0 = arith.muli %arg0, %c1_i32 : i32
    %1 = arith.addi %0, %arg1 : i32
    %c0_i32 = arith.constant 0 : i32
    %c0_i32_0 = arith.constant 0 : i32
    return %c0_i32, %1 : i32, i32
  }
  func.func @transform_1(%arg0: i32, %arg1: i32) -> (i32, i32) {
    %c1_i32 = arith.constant 1 : i32
    %0 = arith.muli %arg0, %c1_i32 : i32
    %1 = arith.addi %0, %arg1 : i32
    %c0_i32 = arith.constant 0 : i32
    %c0_i32_0 = arith.constant 0 : i32
    return %c0_i32, %1 : i32, i32
  }
  func.func @transform_2(%arg0: i32, %arg1: i32) -> (i32, i32, i32) {
    %c1_i32 = arith.constant 1 : i32
    %0 = arith.muli %arg0, %c1_i32 : i32
    %1 = arith.addi %0, %arg1 : i32
    %c0_i32 = arith.constant 0 : i32
    %c0_i32_0 = arith.constant 0 : i32
    %c0_i32_1 = arith.constant 0 : i32
    return %1, %c0_i32, %c0_i32_0 : i32, i32, i32
  }
}

</mosaic_0001>

<bundles_post_ra>
// kernel: tpu_custom_call.1
= control target key start
LH: loop header
LB: loop body
LE: loop exit
PB: predicated region body
PF: predicated region fallthrough
CT: control target
= control target key end

     0   :  { %7 = vsyncpa [#allocation3], 0  ;;  %s254_s0 = inlined_call_operand.hbm [shape: f32[8,256], index: 0, kind: input, shape index: {}]   ;;  %s255_s1 = inlined_call_operand.hbm [shape: f32[8,256], index: 1, kind: input, shape index: {}]   ;;  %s256_s2 = inlined_call_operand.vmem [shape: f32[1,8,1], index: 2, kind: output, shape index: {}]  }
   0x1   :  { %8 = vsyncpa [#allocation5], 0  ;;  %s210_s9 = smov [#allocation2]   ;;  %s211_s11 = smov [#allocation4]  }
   0x2   :  { %s19_s10 = sshll.u32 %s210_s9, 4  ;;  %s33_s12 = sshll.u32 %s211_s11, 4  ;;  %s20_s10 = int_to_ptr.vmem [resolvable:$true] %s19_s10  ;;  %s34_s12 = int_to_ptr.vmem [resolvable:$true] %s33_s12 }
   0x3   :  { %s162_s15 = scalar_lea.hbm %s254_s0, 256 }
   0x4   :  { %p163_p0 = scmp.ne.s32.totalorder %s254_s0, %s162_s15  ;;  %p166_p1 = scmp.lt.u32.totalorder %s162_s15, %s254_s0 }
   0x6   :  { %p168_p2 = pnand %p166_p1, %p163_p0 }
   0x8   :  { %171 = shalt.err (!%p168_p2)
}
   0x9   :  { %s172_s20 = scalar_lea.vmem %s20_s10, 256  ;;  %p177_p4 = scmp.lt.s32.totalorder %s20_s10, %s20_s10 }
   0xa   :  { %p173_p3 = scmp.ne.s32.totalorder %s20_s10, %s172_s20  ;;  %p178_p5 = scmp.lt.s32.totalorder %s172_s20, %s172_s20 }
   0xc   :  { %p179_p6 = por %p178_p5, %p177_p4 }
   0xe   :  { %p180_p7 = pnand %p179_p6, %p173_p3 }
  0x10   :  { %183 = shalt.err (!%p180_p7)
}
  0x11   :  { %22 = dma.hbm_to_vmem [thread:$0]  %s254_s0, 256, %s20_s10, [#allocation3]  }
  0x12   :  { %s184_s25 = scalar_lea.hbm %s255_s1, 256 }
  0x13   :  { %p185_p8 = scmp.ne.s32.totalorder %s255_s1, %s184_s25  ;;  %p188_p9 = scmp.lt.u32.totalorder %s184_s25, %s255_s1 }
  0x15   :  { %p190_p10 = pnand %p188_p9, %p185_p8 }
  0x17   :  { %193 = shalt.err (!%p190_p10)
}
  0x18   :  { %s194_s30 = scalar_lea.vmem %s34_s12, 256  ;;  %p199_p12 = scmp.lt.s32.totalorder %s34_s12, %s34_s12 }
  0x19   :  { %p195_p11 = scmp.ne.s32.totalorder %s34_s12, %s194_s30  ;;  %p200_p13 = scmp.lt.s32.totalorder %s194_s30, %s194_s30 }
  0x1b   :  { %p201_p0 = por %p200_p13, %p199_p12 }
  0x1d   :  { %p202_p1 = pnand %p201_p0, %p195_p11 }
  0x1f   :  { %205 = shalt.err (!%p202_p1)
}
  0x20   :  { %36 = dma.hbm_to_vmem [thread:$0]  %s255_s1, 256, %s34_s12, [#allocation5]  }
  0x21   :  { %206 = dma.done.wait [#allocation3], 256  }
  0x22   :  { %207 = vsyncadd [#allocation3], 4294967040 }
  0x23   :  { %208 = dma.done.wait [#allocation5], 256  }
  0x24   :  { %209 = vsyncadd [#allocation5], 4294967040  ;;  %v58_v0 = vld [vmem:[#allocation2] sm:$0xff]  ;;  %v59_v1 = vld [vmem:[#allocation2 + $0x8] sm:$0xff]  ;;  %vm115_vm2 = vcmask 7168  }
  0x25   :  { %v60_v2 = vld [vmem:[#allocation4] sm:$0xff]  ;;  %v61_v3 = vld [vmem:[#allocation4 + $0x8] sm:$0xff]  ;;  %v76_v5 = vand.u32 2147483647, %v58_v0  ;;  %v77_v6 = vand.u32 2147483647, %v59_v1 }
  0x26   :  { %v62_v4 = vmul.f32 2.0, %v60_v2  ;;  %v63_v7 = vmul.f32 2.0, %v61_v3  ;;  %v84_v30 = vmax.f32 %v58_v0, 0.0  ;;  %v86_v31 = vmul.f32 %v60_v2, %v58_v0 }
  0x27   :  { %v78_v9 = vsub.f32 0.0, %v76_v5  ;;  %v79_v10 = vsub.f32 0.0, %v77_v6  ;;  %v85_v33 = vmax.f32 %v59_v1, 0.0  ;;  %v87_v34 = vmul.f32 %v61_v3, %v59_v1 }
  0x28   :  { %v142_v8 = vadd.f32 -1.0, %v62_v4  ;;  %v143_v11 = vadd.f32 -1.0, %v63_v7  ;;  %v88_v36 = vsub.f32 %v84_v30, %v86_v31 }
  0x29   :  { %v80_v13 = vmul.f32 1.442695, %v78_v9  ;;  %v82_v14 = vmul.f32 1.442695, %v79_v10  ;;  %v89_v38 = vsub.f32 %v85_v33, %v87_v34 }
  0x2a   :  { %v66_v12 = vmul.f32 %v142_v8, %v58_v0  ;;  %v67_v15 = vmul.f32 %v143_v11, %v59_v1 }
  0x2b   :  { %146 = vpow2.f32 %v80_v13 }
  0x2c   :  { %v68_v16 = vand.u32 2147483647, %v66_v12  ;;  %v69_v17 = vand.u32 2147483647, %v67_v15  ;;  %148 = vpow2.f32 %v82_v14  ;;  %vm98_vm0 = vcmp.ge.f32.partialorder %v66_v12, 0.0 }
  0x2d   :  { %vm99_vm1 = vcmp.ge.f32.partialorder %v67_v15, 0.0 }
  0x2e   :  { %v70_v18 = vsub.f32 0.0, %v68_v16  ;;  %v71_v19 = vsub.f32 0.0, %v69_v17 }
  0x30   :  { %v72_v20 = vmul.f32 1.442695, %v70_v18  ;;  %v74_v21 = vmul.f32 1.442695, %v71_v19 }
  0x32   :  { %150 = vpow2.f32 %v72_v20 }
  0x33   :  { %152 = vpow2.f32 %v74_v21 }
  0x35   :  { %v147_v22 = vpop.eup %146 }
  0x36   :  { %v149_v23 = vpop.eup %148  ;;  %v90_v24 = vadd.f32 1.0, %v147_v22 }
  0x37   :  { %v91_v25 = vadd.f32 1.0, %v149_v23 }
  0x38   :  { %154 = vlog2.f32 %v90_v24 }
  0x39   :  { %156 = vlog2.f32 %v91_v25 }
  0x3c   :  { %v151_v26 = vpop.eup %150 }
  0x3d   :  { %v153_v27 = vpop.eup %152  ;;  %v102_v28 = vadd.f32 1.0, %v151_v26  ;;  %v100_v40 = vsel %vm98_vm0, %v151_v26, 1.0 }
  0x3e   :  { %v103_v29 = vadd.f32 1.0, %v153_v27  ;;  %v101_v41 = vsel %vm99_vm1, %v153_v27, 1.0 }
  0x3f   :  { %158 = vrcp.f32 %v102_v28 }
  0x40   :  { %160 = vrcp.f32 %v103_v29 }
  0x42   :  { %v155_v32 = vpop.eup %154 }
  0x43   :  { %v157_v35 = vpop.eup %156  ;;  %v93_v37 = vmul.f32 0.6931472, %v155_v32 }
  0x44   :  { %v95_v39 = vmul.f32 0.6931472, %v157_v35 }
  0x45   :  { %v96_v44 = vadd.f32 %v93_v37, %v88_v36 }
  0x46   :  { %v97_v46 = vadd.f32 %v95_v39, %v89_v38 }
  0x49   :  { %v159_v42 = vpop.eup %158 }
  0x4a   :  { %v161_v43 = vpop.eup %160  ;;  %v105_v45 = vmul.f32 %v159_v42, %v100_v40 }
  0x4b   :  { %v107_v47 = vmul.f32 %v161_v43, %v101_v41 }
  0x4c   :  { %v108_v48 = vmul.f32 %v105_v45, %v105_v45 }
  0x4d   :  { %v109_v49 = vmul.f32 %v107_v47, %v107_v47 }
  0x4e   :  { %v110_v50 = vmul.f32 %v108_v48, %v96_v44 }
  0x4f   :  { %v111_v51 = vmul.f32 %v109_v49, %v97_v46 }
  0x51   :  { %v112_v52 = vadd.f32 %v111_v51, %v110_v50 }
  0x53   :  { %113 = vadd.xlane.f32.xlu0 %v112_v52 }
  0xe0   :  { %v114_v53 = vpop.xlane.xlu0 %113 }
  0xe1   :  { %116 = vst.msk [vmem:[%s256_s2] sm:$0xff] %vm115_vm2, %v114_v53 }
  0xe2   :  { %132 = vsyncpa [#allocation3], 1 }
  0xe3   :  { %133 = vsyncpa [#allocation5], 1 }

</bundles_post_ra>
